<compile_context>
chip_gen: v5e
topology: v5e:2x2
jax: 0.10.0
libtpu: 0.0.40
codegen_flags: <defaults>
</compile_context>

<pallas_src>
import functools

import jax
import jax.numpy as jnp
from jax.experimental import pallas as pl
from jax.experimental.pallas import tpu as pltpu


def _reduce_kernel(x_ref, sum_ref, acc_ref, *, inv_hw):
    """Accumulate per-(b, c) spatial sums across the spatial grid axis."""
    s = pl.program_id(1)

    @pl.when(s == 0)
    def _():
        acc_ref[...] = jnp.zeros_like(acc_ref)

    # f32 accumulation regardless of input dtype; reduce over the lane axis.
    acc_ref[...] += jnp.sum(x_ref[...].astype(jnp.float32), axis=-1,
                            keepdims=True)

    @pl.when(s == pl.num_programs(1) - 1)
    def _():
        sum_ref[...] = acc_ref[...] * inv_hw   # mean, scaled once at the end


def _scale_kernel(s_ref, x_ref, o_ref):
    """out = x * gate, gate broadcast along the spatial (lane) axis."""
    x = x_ref[...]                              # native dtype tile
    o_ref[...] = x * s_ref[...].astype(x.dtype)  # (1,C,1) -> (1,C,HW_tile)


def _pick_hw_tile(hw, c, itemsize, max_bytes=2 * 1024 * 1024, max_lanes=2048):
    """Largest multiple-of-128 divisor of hw that fits the per-block budget."""
    if hw % 128 != 0:
        return hw  # small / odd spatial extents: single full-width block
    lane_budget = max(128, max_bytes // max(1, c * itemsize))
    best = 128
    for t in range(128, hw + 1, 128):
        if hw % t == 0 and t <= min(max_lanes, lane_budget):
            best = t
    return best


def cse_layer(x_nchw, w1, b1, w2, b2):
    """Channel SE layer.  x_nchw: (B, C, H, W); w1: (C, C//r); b1: (C//r,);
    w2: (C//r, C); b2: (C,).  Returns (B, C, H, W) in x's dtype."""
    B, C, H, W = x_nchw.shape
    HW = H * W
    x = x_nchw.reshape(B, C, HW)                 # keep native dtype in HBM
    itemsize = jnp.dtype(x.dtype).itemsize

    hw_tile = _pick_hw_tile(HW, C, itemsize)
    n_hw = HW // hw_tile

    vmem_cap = 32 * 1024 * 1024                  # safe budget on v5e/v6e/v7x

    # ------------- Pass 1: tiled global average pool (reduction) -----------
    sums = pl.pallas_call(
        functools.partial(_reduce_kernel, inv_hw=1.0 / float(HW)),
        out_shape=jax.ShapeDtypeStruct((B, C, 1), jnp.float32),
        grid_spec=pltpu.PrefetchScalarGridSpec(
            num_scalar_prefetch=0,
            grid=(B, n_hw),
            in_specs=[
                pl.BlockSpec((1, C, hw_tile), lambda b, s: (b, 0, s)),
            ],
            out_specs=pl.BlockSpec((1, C, 1), lambda b, s: (b, 0, 0)),
            scratch_shapes=[pltpu.VMEM((1, C, 1), jnp.float32)],
        ),
        compiler_params=pltpu.CompilerParams(
            dimension_semantics=("parallel", "arbitrary"),
            vmem_limit_bytes=vmem_cap,
        ),
        cost_estimate=pl.CostEstimate(
            flops=B * C * HW,
            transcendentals=0,
            bytes_accessed=x.size * itemsize + B * C * 4,
        ),
    )(x)

    # ------------- Tiny MLP on (B, C): plain JAX (sub-MXU-tile sized) ------
    y = sums[:, :, 0].astype(jnp.float32)        # (B, C)
    h = y @ w1.astype(jnp.float32) + b1.astype(jnp.float32)
    # ELU(alpha=1); clamp the exp argument so large positives never hit inf.
    h = jnp.where(h > 0, h, jnp.expm1(jnp.minimum(h, 0.0)))
    gate = jax.nn.sigmoid(h @ w2.astype(jnp.float32) + b2.astype(jnp.float32))
    gate = gate[:, :, None]                      # (B, C, 1), f32

    # ------------- Pass 2: tiled channel-wise scaling (streaming) ----------
    out = pl.pallas_call(
        _scale_kernel,
        out_shape=jax.ShapeDtypeStruct((B, C, HW), x.dtype),
        grid_spec=pltpu.PrefetchScalarGridSpec(
            num_scalar_prefetch=0,
            grid=(B, n_hw),
            in_specs=[
                pl.BlockSpec((1, C, 1), lambda b, s: (b, 0, 0)),
                pl.BlockSpec((1, C, hw_tile), lambda b, s: (b, 0, s)),
            ],
            out_specs=pl.BlockSpec((1, C, hw_tile), lambda b, s: (b, 0, s)),
        ),
        compiler_params=pltpu.CompilerParams(
            dimension_semantics=("parallel", "parallel"),
            vmem_limit_bytes=vmem_cap,
        ),
        cost_estimate=pl.CostEstimate(
            flops=B * C * HW,
            transcendentals=0,
            bytes_accessed=2 * x.size * itemsize + B * C * 4,
        ),
    )(gate, x)

    return out.reshape(B, C, H, W)


if __name__ == "__main__":
    B, C, H, W = 2, 4, 16, 16
    reduction = 2
    Cr = C // reduction

    key = jax.random.PRNGKey(0)
    kx, k1, k2, k3, k4 = jax.random.split(key, 5)

    x = jax.random.normal(kx, (B, C, H, W), dtype=jnp.float32)
    # Linear weights stored transposed ((in, out)) so the MLP computes y @ W.
    w1 = jax.random.normal(k1, (C, Cr), dtype=jnp.float32) * 0.1
    b1 = jax.random.normal(k2, (Cr,), dtype=jnp.float32) * 0.1
    w2 = jax.random.normal(k3, (Cr, C), dtype=jnp.float32) * 0.1
    b2 = jax.random.normal(k4, (C,), dtype=jnp.float32) * 0.1

    out = cse_layer(x, w1, b1, w2, b2)
    jax.block_until_ready(out)

    # Pure-JAX reference check (matches the PyTorch forward semantics).
    y_ref = jnp.mean(x, axis=(2, 3))
    h_ref = y_ref @ w1 + b1
    h_ref = jnp.where(h_ref > 0, h_ref, jnp.exp(h_ref) - 1.0)
    g_ref = jax.nn.sigmoid(h_ref @ w2 + b2)
    ref = x * g_ref[:, :, None, None]

    assert out.dtype == x.dtype, "output dtype must match input dtype"
    assert jnp.allclose(out, ref, atol=1e-5, rtol=1e-5), "mismatch vs reference"

    print("KERNEL_OK")
</pallas_src>

<mosaic_0001>
module attributes {stable_mosaic.version = 11 : i64} {
  func.func @_reduce_kernel(%arg0: i32, %arg1: i32, %arg2: memref<1x4x256xf32, #tpu.memory_space<vmem>>, %arg3: memref<1x4x1xf32, #tpu.memory_space<vmem>>, %arg4: memref<1x4x1xf32, #tpu.memory_space<vmem>>) attributes {dimension_semantics = [#tpu.dimension_semantics<parallel>, #tpu.dimension_semantics<arbitrary>], iteration_bounds = array<i64: 2, 1>, scalar_prefetch = 0 : i64, scratch_operands = 1 : i64, tpu.core_type = #tpu.core_type<tc>, window_params = [{transform_indices = @transform_0, window_bounds = array<i64: 1, 4, 256>}, {transform_indices = @transform_1, window_bounds = array<i64: 1, 4, 1>}]} {
    %c0_i32 = arith.constant 0 : i32
    %0 = arith.cmpi eq, %arg1, %c0_i32 : i32
    %1 = arith.extui %0 : i1 to i32
    %c0_i32_0 = arith.constant 0 : i32
    %2 = arith.cmpi ne, %1, %c0_i32_0 : i32
    scf.if %2 {
      %cst_11 = arith.constant 0.000000e+00 : f32
      %12 = vector.broadcast %cst_11 : f32 to vector<1x4x1xf32>
      %c0_12 = arith.constant 0 : index
      %c0_13 = arith.constant 0 : index
      %c0_14 = arith.constant 0 : index
      %13 = vector.load %arg4[%c0_12, %c0_13, %c0_14] : memref<1x4x1xf32, #tpu.memory_space<vmem>>, vector<1x4x1xf32>
      tpu.vector_store %arg4[%c0_12, %c0_13, %c0_14], %12 {strides = array<i32>} : memref<1x4x1xf32, #tpu.memory_space<vmem>>, vector<1x4x1xf32>,
    } else {
    }
    %c0 = arith.constant 0 : index
    %c0_1 = arith.constant 0 : index
    %c0_2 = arith.constant 0 : index
    %3 = vector.load %arg4[%c0, %c0_1, %c0_2] : memref<1x4x1xf32, #tpu.memory_space<vmem>>, vector<1x4x1xf32>
    %c0_3 = arith.constant 0 : index
    %c0_4 = arith.constant 0 : index
    %c0_5 = arith.constant 0 : index
    %4 = vector.load %arg2[%c0_3, %c0_4, %c0_5] : memref<1x4x256xf32, #tpu.memory_space<vmem>>, vector<1x4x256xf32>
    %cst = arith.constant dense<0.000000e+00> : vector<1x4xf32>
    %5 = vector.multi_reduction <add>, %4, %cst [2] : vector<1x4x256xf32> to vector<1x4xf32>
    %6 = vector.shape_cast %5 : vector<1x4xf32> to vector<1x4x1xf32>
    %7 = arith.addf %3, %6 : vector<1x4x1xf32>
    %c0_6 = arith.constant 0 : index
    %c0_7 = arith.constant 0 : index
    %c0_8 = arith.constant 0 : index
    %8 = vector.load %arg4[%c0_6, %c0_7, %c0_8] : memref<1x4x1xf32, #tpu.memory_space<vmem>>, vector<1x4x1xf32>
    tpu.vector_store %arg4[%c0_6, %c0_7, %c0_8], %7 {strides = array<i32>} : memref<1x4x1xf32, #tpu.memory_space<vmem>>, vector<1x4x1xf32>,
    %c0_i32_9 = arith.constant 0 : i32
    %9 = arith.cmpi eq, %arg1, %c0_i32_9 : i32
    %10 = arith.extui %9 : i1 to i32
    %c0_i32_10 = arith.constant 0 : i32
    %11 = arith.cmpi ne, %10, %c0_i32_10 : i32
    scf.if %11 {
      %c0_11 = arith.constant 0 : index
      %c0_12 = arith.constant 0 : index
      %c0_13 = arith.constant 0 : index
      %12 = vector.load %arg4[%c0_11, %c0_12, %c0_13] : memref<1x4x1xf32, #tpu.memory_space<vmem>>, vector<1x4x1xf32>
      %cst_14 = arith.constant 3.906250e-03 : f32
      %13 = vector.broadcast %cst_14 : f32 to vector<1x4x1xf32>
      %14 = arith.mulf %12, %13 : vector<1x4x1xf32>
      %c0_15 = arith.constant 0 : index
      %c0_16 = arith.constant 0 : index
      %c0_17 = arith.constant 0 : index
      %15 = vector.load %arg3[%c0_15, %c0_16, %c0_17] : memref<1x4x1xf32, #tpu.memory_space<vmem>>, vector<1x4x1xf32>
      tpu.vector_store %arg3[%c0_15, %c0_16, %c0_17], %14 {strides = array<i32>} : memref<1x4x1xf32, #tpu.memory_space<vmem>>, vector<1x4x1xf32>,
    } else {
    }
    return
  }
  func.func @transform_0(%arg0: i32, %arg1: i32) -> (i32, i32, i32) {
    %c0_i32 = arith.constant 0 : i32
    %c0_i32_0 = arith.constant 0 : i32
    return %arg0, %c0_i32, %arg1 : i32, i32, i32
  }
  func.func @transform_1(%arg0: i32, %arg1: i32) -> (i32, i32, i32) {
    %c0_i32 = arith.constant 0 : i32
    %c0_i32_0 = arith.constant 0 : i32
    %c0_i32_1 = arith.constant 0 : i32
    return %arg0, %c0_i32, %c0_i32_0 : i32, i32, i32
  }
}

</mosaic_0001>

<bundles_post_ra>
// kernel: tpu_custom_call.1
= control target key start
LH: loop header
LB: loop body
LE: loop exit
PB: predicated region body
PF: predicated region fallthrough
CT: control target
= control target key end

     0   :  { %6 = vsyncpa [#allocation4], 0  ;;  %s510_s0 = inlined_call_operand.hbm [shape: f32[2,4,256], index: 0, kind: input, shape index: {}]   ;;  %s511_s1 = inlined_call_operand.vmem [shape: f32[2,4,1], index: 1, kind: output, shape index: {}]  }
   0x1   :  { %8 = vsyncpa [#allocation4 + $0x1], 0  ;;  %s419_s6 = smov 0   ;;  %s421_s7 = smov 0  }
   0x2   :  { %s423_s8 = smov 0   ;;  %s425_s9 = smov 0  }
   0x3   :  { %s427_s10 = smov 0   ;;  %s429_s11 = smov 0  }
   0x4 LB: > { %s257_s12 = sadd.s32 4294967295, %s406_s11   ;;  %s26_s13 = sadd.s32 1, %s402_s10  ;;  %s406_s11 = sphi %s429_s11, %s14_s11   ;;  %s402_s10 = sphi %s427_s10, %s518_s10   ;;  %s398_s9 = sphi %s425_s9, %s517_s9   ;;  %s394_s8 = sphi %s423_s8, %s516_s8   ;;  %s390_s7 = sphi %s421_s7, %s515_s7   ;;  %s386_s6 = sphi %s419_s6, %s514_s6  }
   0x5   : > { %p28_p0 = scmp.ge.s32.totalorder %s26_s13, 2  ;;  %s35_s14 = sadd.s32 1, %s394_s8 }
   0x6   : > { %p42_p1 = scmp.ne.s32.totalorder %s394_s8, %s390_s7  ;;  %p43_p2 = scmp.eq.s32.totalorder %s406_s11, 0 }
   0x7   : > { %s520_s13 = smov (%p28_p0, %s26_s13), 0  ;;  %p48_p4 = scmp.ne.s32.totalorder %s390_s7, %s386_s6 }
   0x8   : > { %p455_p3 = por %p43_p2, %p42_p1  ;;  %s30_s16 = ssub.s32 %s402_s10, %s520_s13 }
   0x9   : > { %p49_p5 = scmp.eq.s32.totalorder %s257_s12, 0  ;;  %p33_p6 = scmp.eq.s32.totalorder %s30_s16, 0 }
   0xa   : > { %p276_p8 = scmp.lt.s32.totalorder %s406_s11, 2  ;;  %s98_s19 = sand.u32 1, %s394_s8  }
   0xb   : > { %p462_p7 = por %p49_p5, %p48_p4  ;;  %s269_s20 = sshll.u32 %s402_s10, 3 }
   0xc   : > { %s468_s18 = scalar_select %p33_p6, %s394_s8, %s35_s14  }
   0xd   : > { %s261_s21 = sshll.u32 %s98_s19, 3  ;;  %s109_s24 = scalar_lea.hbm %s510_s0, %s269_s20 }
   0xe   : > { %s111_s25 = sshll.u32 %s109_s24, 4  ;;  %s102_s26 = scalar_lea.vmem [#allocation3], %s261_s21  ;;  %s112_s25 = int_to_ptr.hbm [resolvable:$true] %s111_s25 }
   0xf   : > { %s113_s27 = sshll.u32 %s102_s26, 4  ;;  %p273_p9 = pnand %p276_p8, %p455_p3  ;;  %s114_s27 = int_to_ptr.vmem [resolvable:$true] %s113_s27 }
  0x10   : > { %p264_p10 = scmp.ge.s32.totalorder %s406_s11, 1  ;;  %p118_p11 = scmp.lt.s32.totalorder %s406_s11, 3 }
  0x11   : > { %s99_s28 = scalar_lea.sflag [#allocation4], %s98_s19 }
  0x12   : > { %275 = dma.hbm_to_vmem [thread:$0]  (!%p273_p9), %s112_s25, 128, %s114_s27, %s99_s28  }
  0x13   : > { %p119_p12 = pnand %p264_p10, %p118_p11 }
  0x14   : > { %s124_s29 = sand.u32 (!%p119_p12), 1, %s390_s7  }
  0x15   : > { %122 = sbr.rel (%p119_p12) target bundleno = 169 (0xa9), region = 24  ;;  %s265_s30 = sshll.u32 (!%p119_p12), %s124_s29, 3 }
  0x16   : > { %s125_s2 = scalar_lea.sflag (!%p119_p12), [#allocation4], %s124_s29  ;;  %s128_s3 = scalar_lea.vmem (!%p119_p12), [#allocation3], %s265_s30 }
  0x1a   : > { %381 = dma.done.wait (%p462_p7), %s125_s2, 128  }
  0x1b   : > { %383 = vsyncadd (%p462_p7), %s125_s2, 4294967168  ;;  %vm156_vm0 = vcmask 3072   ;;  %v408_v0 = vmov 0.0   ;;  %v159_v1 = vld [vmem:[%s128_s3] sm:$0xff]  ;;  %vm166_vm1 = vcmask 1043456   ;;  %p148_p13 = scmp.lt.s32.totalorder %s398_s9, 1 }
  0x1c   : > { %157 = vst.msk [vmem:[#allocation2] sm:$0xf] %vm156_vm0, %v408_v0 }
  0x1d   : > { %161 = vst [vmem:[#allocation1] ss:$2 sm:$0xff] %v159_v1  ;;  %s522_s9 = smov (!%p148_p13, %s398_s9), 1 }
  0x1e   : > { %s266_s4 = sshll.u32 %s522_s9, 2 }
  0x1f   : > { %s151_s12 = scalar_lea.vmem %s511_s1, %s266_s4 }
  0x23   : > { %v158_v7 = vld [vmem:[#allocation2] sm:$0xf] }
  0x24   : > { %v162_v2 = vld.sshfl [vmem:[#allocation1] sm:$0xff pattern:$0x75316420]  ;;  %v163_v3 = vld.sshfl [vmem:[#allocation1 + $0x8] sm:$0xff pattern:$0x75316420] }
  0x25   : > { %v167_v4 = vsel %vm166_vm1, %v162_v2, 0.0  ;;  %v168_v5 = vsel %vm166_vm1, %v163_v3, 0.0 }
  0x26   : > { %v169_v6 = vadd.f32 %v168_v5, %v167_v4 }
  0x28   : > { %170 = vadd.xlane.f32.xlu0 %v169_v6 }
  0x9b   : > { %v171_v8 = vpop.xlane.xlu0 %170 }
  0x9c   : > { %v172_v9 = vadd.f32 %v171_v8, %v158_v7 }
  0x9e   : > { %174 = vst.msk [vmem:[#allocation2] sm:$0xf] %vm156_vm0, %v172_v9 }
  0xa5   : > { %v178_v10 = vld [vmem:[#allocation2] sm:$0xf] }
  0xa6   : > { %v179_v11 = vmul.f32 0.00390625, %v178_v10 }
  0xa8   : > { %180 = vst.msk [vmem:[%s151_s12] sm:$0xf] %vm156_vm0, %v179_v11 }
  0xa9 PF: > { %s14_s11 = sadd.s32 1, %s406_s11   ;;  %s514_s6 = smov %s390_s7 }
  0xaa   : > { %p11_p0 = scmp.ge.s32.totalorder %s14_s11, 4   ;;  %s515_s7 = smov %s394_s8 }
  0xab   : > { %s516_s8 = smov %s468_s18  ;;  %s517_s9 = smov %s402_s10 }
  0xac   : > { %s518_s10 = smov %s520_s13  ;;  %13 = sbr.rel (!%p11_p0) target bundleno = 4 (0x4), region = 72 }
  0xb1   :  { %200 = vsyncpa [#allocation4], 1 }
  0xb2   :  { %202 = vsyncpa [#allocation4 + $0x1], 1 }

</bundles_post_ra>
